<compile_context>
chip_gen: v5e
topology: v5e:2x2
jax: 0.10.0
libtpu: 0.0.40
codegen_flags: <defaults>
</compile_context>

<pallas_src>
import functools

import jax
import jax.numpy as jnp
from jax.experimental import pallas as pl
from jax.experimental.pallas import tpu as pltpu

HIDDEN = 10


def _round_up(x, m):
    return ((x + m - 1) // m) * m


def _dqn_kernel(x_ref, w1_ref, b1_ref, w2_ref, b2_ref, w3_ref, b3_ref, o_ref):
    """One batch tile, fully lane-dense.

    x_ref : (tile_r, G*D) f32 -- G consecutive samples packed per row (this is
            just the row-major view of the (batch, D) input; no transposes).
    w*_ref: kron(I_G, W.T) expanded weights (block-diagonal, built on host).
    b*_ref: (1, G*fan_out) tiled biases.
    o_ref : (tile_r, G*A) f32 -- reshapes back to (batch, A) for free.
    """
    x = x_ref[...]
    h = jnp.dot(x, w1_ref[...], preferred_element_type=jnp.float32) + b1_ref[...]
    h = jnp.maximum(h, 0.0)
    h = jnp.dot(h, w2_ref[...], preferred_element_type=jnp.float32) + b2_ref[...]
    h = jnp.maximum(h, 0.0)
    out = jnp.dot(h, w3_ref[...], preferred_element_type=jnp.float32) + b3_ref[...]
    o_ref[...] = out.astype(o_ref.dtype)


def expand_params(params, group):
    """Expand each Linear so G samples share one lane-dense matmul.

    For W (out, in):  We = kron(I_G, W.T), shape (G*in, G*out), so a packed row
    [x_0 | x_1 | ... | x_{G-1}] @ We = [x_0 W.T | x_1 W.T | ... | x_{G-1} W.T].
    """
    eye = jnp.eye(group, dtype=jnp.float32)

    def exp_w(w):
        return jnp.kron(eye, w.astype(jnp.float32).T)

    def exp_b(b):
        return jnp.tile(b.astype(jnp.float32).reshape(1, -1), (1, group))

    return (exp_w(params["w1"]), exp_b(params["b1"]),
            exp_w(params["w2"]), exp_b(params["b2"]),
            exp_w(params["w3"]), exp_b(params["b3"]))


@functools.partial(jax.jit, static_argnames=("tile_b",))
def dqn_forward(x, params, *, tile_b=32768):
    """DQN forward pass. x: (batch, input_size); params in PyTorch (out,in) layout."""
    x = jnp.asarray(x).astype(jnp.float32)            # matches x.float()
    batch, input_size = x.shape
    hidden = params["w1"].shape[0]
    num_actions = params["w3"].shape[0]

    # Pack G samples per (<=128-lane) row: (batch, D) -> (rows, G*D) is a free,
    # row-major reshape, so the kernel's x blocks come straight from HBM with
    # no transpose/relayout pass.  A pad copy happens only if batch % G != 0.
    group = max(1, 128 // input_size)
    b_grp = _round_up(batch, group)
    if b_grp != batch:
        x = jnp.pad(x, ((0, b_grp - batch), (0, 0)))
    rows = b_grp // group
    in_d = group * input_size
    hid_d = group * hidden
    act_d = group * num_actions
    xr = x.reshape(rows, in_d)

    # Balanced row tiles (multiples of 8 sublanes); >= 2 tiles when possible so
    # both v7x TensorCores get work; the last tile may read past the end of xr
    # (garbage rows only reach output rows that are sliced off below).
    target_rows = max(8, _round_up(tile_b, group) // group)
    n_tiles = pl.cdiv(rows, target_rows)
    if rows >= 16:
        n_tiles = max(n_tiles, 2)
    tile_r = rows if n_tiles == 1 else _round_up(pl.cdiv(rows, n_tiles), 8)
    grid_n = pl.cdiv(rows, tile_r)
    out_rows = grid_n * tile_r

    w1e, b1e, w2e, b2e, w3e, b3e = expand_params(params, group)

    def full_spec(a):
        # Whole (tiny) array as one block, constant index map -> fetched once,
        # stays VMEM-resident across all batch tiles, no in-kernel slicing.
        return pl.BlockSpec(a.shape, lambda i: (0, 0))

    flops = 2 * out_rows * group * (input_size * hidden + hidden * hidden
                                    + hidden * num_actions)
    bytes_accessed = 4 * (out_rows * (in_d + act_d)
                          + w1e.size + w2e.size + w3e.size
                          + b1e.size + b2e.size + b3e.size)

    out = pl.pallas_call(
        _dqn_kernel,
        out_shape=jax.ShapeDtypeStruct((out_rows, act_d), jnp.float32),
        grid=(grid_n,),
        in_specs=[
            pl.BlockSpec((tile_r, in_d), lambda i: (i, 0)),   # x tile, lane dense
            full_spec(w1e), full_spec(b1e),
            full_spec(w2e), full_spec(b2e),
            full_spec(w3e), full_spec(b3e),
        ],
        out_specs=pl.BlockSpec((tile_r, act_d), lambda i: (i, 0)),
        compiler_params=pltpu.CompilerParams(
            dimension_semantics=("parallel",),
            vmem_limit_bytes=40 * 1024 * 1024,
        ),
        cost_estimate=pl.CostEstimate(
            flops=flops, transcendentals=0, bytes_accessed=bytes_accessed),
    )(xr, w1e, b1e, w2e, b2e, w3e, b3e)

    # (rows, G*A) -> (batch, A): another free row-major reshape + tail slice.
    return out.reshape(out_rows * group, num_actions)[:batch]


def init_dqn_params(key, input_size, num_actions, hidden=HIDDEN):
    """PyTorch-default-style init, weights stored PyTorch-native (out, in)."""
    ks = jax.random.split(key, 6)

    def linear_init(kw, kb, fan_in, fan_out):
        bound = 1.0 / jnp.sqrt(jnp.float32(fan_in))
        w = jax.random.uniform(kw, (fan_out, fan_in), jnp.float32, -bound, bound)
        b = jax.random.uniform(kb, (fan_out,), jnp.float32, -bound, bound)
        return w, b

    w1, b1 = linear_init(ks[0], ks[1], input_size, hidden)
    w2, b2 = linear_init(ks[2], ks[3], hidden, hidden)
    w3, b3 = linear_init(ks[4], ks[5], hidden, num_actions)
    return {"w1": w1, "b1": b1, "w2": w2, "b2": b2, "w3": w3, "b3": b3}


def _reference(x, params):
    x = x.astype(jnp.float32)
    h1 = jnp.maximum(x @ params["w1"].T + params["b1"], 0.0)
    h2 = jnp.maximum(h1 @ params["w2"].T + params["b2"], 0.0)
    return h2 @ params["w3"].T + params["b3"]


if __name__ == "__main__":
    key = jax.random.PRNGKey(0)
    k_params, k1, k2, k3 = jax.random.split(key, 4)

    input_size, num_actions = 16, 4
    params = init_dqn_params(k_params, input_size, num_actions)

    # Small batch: single tile (8 packed rows of 8 samples each).
    x_a = jax.random.normal(k1, (64, input_size), dtype=jnp.float32)
    out_a = jax.block_until_ready(dqn_forward(x_a, params))
    assert out_a.shape == (64, num_actions)
    assert jnp.allclose(out_a, _reference(x_a, params), atol=1e-4, rtol=1e-4)

    # Batch not a multiple of the 8-sample group: exercises the tiny group pad
    # plus the ragged (read-past-the-end) last tile of the 2-tile grid.
    x_b = jax.random.normal(k2, (300, input_size), dtype=jnp.float32)
    out_b = jax.block_until_ready(dqn_forward(x_b, params))
    assert out_b.shape == (300, num_actions)
    assert jnp.allclose(out_b, _reference(x_b, params), atol=1e-4, rtol=1e-4)

    # Multi-tile grid (forced small tile) with an exact fit.
    x_c = jax.random.normal(k3, (1024, input_size), dtype=jnp.float32)
    out_c = jax.block_until_ready(dqn_forward(x_c, params, tile_b=256))
    assert out_c.shape == (1024, num_actions)
    assert jnp.allclose(out_c, _reference(x_c, params), atol=1e-4, rtol=1e-4)

    print("KERNEL_OK")
</pallas_src>

<mosaic_0001>
module attributes {stable_mosaic.version = 11 : i64} {
  func.func @_dqn_kernel(%arg0: i32, %arg1: memref<8x128xf32, #tpu.memory_space<vmem>>, %arg2: memref<128x80xf32, #tpu.memory_space<vmem>>, %arg3: memref<1x80xf32, #tpu.memory_space<vmem>>, %arg4: memref<80x80xf32, #tpu.memory_space<vmem>>, %arg5: memref<1x80xf32, #tpu.memory_space<vmem>>, %arg6: memref<80x32xf32, #tpu.memory_space<vmem>>, %arg7: memref<1x32xf32, #tpu.memory_space<vmem>>, %arg8: memref<8x32xf32, #tpu.memory_space<vmem>>) attributes {dimension_semantics = [#tpu.dimension_semantics<parallel>], iteration_bounds = array<i64: 1>, scalar_prefetch = 0 : i64, scratch_operands = 0 : i64, tpu.core_type = #tpu.core_type<tc>, window_params = [{transform_indices = @transform_0, window_bounds = array<i64: 8, 128>}, {pipeline_mode = #tpu.pipeline_mode<synchronous>, transform_indices = @transform_1, window_bounds = array<i64: 128, 80>}, {pipeline_mode = #tpu.pipeline_mode<synchronous>, transform_indices = @transform_2, window_bounds = array<i64: 1, 80>}, {pipeline_mode = #tpu.pipeline_mode<synchronous>, transform_indices = @transform_3, window_bounds = array<i64: 80, 80>}, {pipeline_mode = #tpu.pipeline_mode<synchronous>, transform_indices = @transform_4, window_bounds = array<i64: 1, 80>}, {pipeline_mode = #tpu.pipeline_mode<synchronous>, transform_indices = @transform_5, window_bounds = array<i64: 80, 32>}, {pipeline_mode = #tpu.pipeline_mode<synchronous>, transform_indices = @transform_6, window_bounds = array<i64: 1, 32>}, {transform_indices = @transform_7, window_bounds = array<i64: 8, 32>}]} {
    %c0 = arith.constant 0 : index
    %c0_0 = arith.constant 0 : index
    %0 = vector.load %arg1[%c0, %c0_0] : memref<8x128xf32, #tpu.memory_space<vmem>>, vector<8x128xf32>
    %c0_1 = arith.constant 0 : index
    %c0_2 = arith.constant 0 : index
    %1 = vector.load %arg2[%c0_1, %c0_2] : memref<128x80xf32, #tpu.memory_space<vmem>>, vector<128x80xf32>
    %cst = arith.constant dense<0.000000e+00> : vector<8x80xf32>
    %2 = tpu.matmul %0, %1, %cst {dimension_numbers = #tpu.dot_dimension_numbers<[1], [0], [0], [1], [0, 0, 1, 1], [], []>} : vector<8x128xf32>, vector<128x80xf32>, vector<8x80xf32> -> vector<8x80xf32>
    %c0_3 = arith.constant 0 : index
    %c0_4 = arith.constant 0 : index
    %3 = vector.load %arg3[%c0_3, %c0_4] : memref<1x80xf32, #tpu.memory_space<vmem>>, vector<1x80xf32>
    %4 = vector.broadcast %3 : vector<1x80xf32> to vector<8x80xf32>
    %5 = arith.addf %2, %4 : vector<8x80xf32>
    %cst_5 = arith.constant 0.000000e+00 : f32
    %6 = vector.broadcast %cst_5 : f32 to vector<8x80xf32>
    %7 = arith.maximumf %5, %6 : vector<8x80xf32>
    %c0_6 = arith.constant 0 : index
    %c0_7 = arith.constant 0 : index
    %8 = vector.load %arg4[%c0_6, %c0_7] : memref<80x80xf32, #tpu.memory_space<vmem>>, vector<80x80xf32>
    %cst_8 = arith.constant dense<0.000000e+00> : vector<8x80xf32>
    %9 = tpu.matmul %7, %8, %cst_8 {dimension_numbers = #tpu.dot_dimension_numbers<[1], [0], [0], [1], [0, 0, 1, 1], [], []>} : vector<8x80xf32>, vector<80x80xf32>, vector<8x80xf32> -> vector<8x80xf32>
    %c0_9 = arith.constant 0 : index
    %c0_10 = arith.constant 0 : index
    %10 = vector.load %arg5[%c0_9, %c0_10] : memref<1x80xf32, #tpu.memory_space<vmem>>, vector<1x80xf32>
    %11 = vector.broadcast %10 : vector<1x80xf32> to vector<8x80xf32>
    %12 = arith.addf %9, %11 : vector<8x80xf32>
    %cst_11 = arith.constant 0.000000e+00 : f32
    %13 = vector.broadcast %cst_11 : f32 to vector<8x80xf32>
    %14 = arith.maximumf %12, %13 : vector<8x80xf32>
    %c0_12 = arith.constant 0 : index
    %c0_13 = arith.constant 0 : index
    %15 = vector.load %arg6[%c0_12, %c0_13] : memref<80x32xf32, #tpu.memory_space<vmem>>, vector<80x32xf32>
    %cst_14 = arith.constant dense<0.000000e+00> : vector<8x32xf32>
    %16 = tpu.matmul %14, %15, %cst_14 {dimension_numbers = #tpu.dot_dimension_numbers<[1], [0], [0], [1], [0, 0, 1, 1], [], []>} : vector<8x80xf32>, vector<80x32xf32>, vector<8x32xf32> -> vector<8x32xf32>
    %c0_15 = arith.constant 0 : index
    %c0_16 = arith.constant 0 : index
    %17 = vector.load %arg7[%c0_15, %c0_16] : memref<1x32xf32, #tpu.memory_space<vmem>>, vector<1x32xf32>
    %18 = vector.broadcast %17 : vector<1x32xf32> to vector<8x32xf32>
    %19 = arith.addf %16, %18 : vector<8x32xf32>
    %c0_17 = arith.constant 0 : index
    %c0_18 = arith.constant 0 : index
    %20 = vector.load %arg8[%c0_17, %c0_18] : memref<8x32xf32, #tpu.memory_space<vmem>>, vector<8x32xf32>
    tpu.vector_store %arg8[%c0_17, %c0_18], %19 {strides = array<i32>} : memref<8x32xf32, #tpu.memory_space<vmem>>, vector<8x32xf32>,
    return
  }
  func.func @transform_0(%arg0: i32) -> (i32, i32) {
    %c0_i32 = arith.constant 0 : i32
    %c0_i32_0 = arith.constant 0 : i32
    return %arg0, %c0_i32 : i32, i32
  }
  func.func @transform_1(%arg0: i32) -> (i32, i32) {
    %c0_i32 = arith.constant 0 : i32
    %c0_i32_0 = arith.constant 0 : i32
    %c0_i32_1 = arith.constant 0 : i32
    return %c0_i32, %c0_i32_0 : i32, i32
  }
  func.func @transform_2(%arg0: i32) -> (i32, i32) {
    %c0_i32 = arith.constant 0 : i32
    %c0_i32_0 = arith.constant 0 : i32
    %c0_i32_1 = arith.constant 0 : i32
    return %c0_i32, %c0_i32_0 : i32, i32
  }
  func.func @transform_3(%arg0: i32) -> (i32, i32) {
    %c0_i32 = arith.constant 0 : i32
    %c0_i32_0 = arith.constant 0 : i32
    %c0_i32_1 = arith.constant 0 : i32
    return %c0_i32, %c0_i32_0 : i32, i32
  }
  func.func @transform_4(%arg0: i32) -> (i32, i32) {
    %c0_i32 = arith.constant 0 : i32
    %c0_i32_0 = arith.constant 0 : i32
    %c0_i32_1 = arith.constant 0 : i32
    return %c0_i32, %c0_i32_0 : i32, i32
  }
  func.func @transform_5(%arg0: i32) -> (i32, i32) {
    %c0_i32 = arith.constant 0 : i32
    %c0_i32_0 = arith.constant 0 : i32
    %c0_i32_1 = arith.constant 0 : i32
    return %c0_i32, %c0_i32_0 : i32, i32
  }
  func.func @transform_6(%arg0: i32) -> (i32, i32) {
    %c0_i32 = arith.constant 0 : i32
    %c0_i32_0 = arith.constant 0 : i32
    %c0_i32_1 = arith.constant 0 : i32
    return %c0_i32, %c0_i32_0 : i32, i32
  }
  func.func @transform_7(%arg0: i32) -> (i32, i32) {
    %c0_i32 = arith.constant 0 : i32
    %c0_i32_0 = arith.constant 0 : i32
    return %arg0, %c0_i32 : i32, i32
  }
}

</mosaic_0001>

<bundles_post_ra>
// kernel: dqn_forward.1
= control target key start
LH: loop header
LB: loop body
LE: loop exit
PB: predicated region body
PF: predicated region fallthrough
CT: control target
= control target key end

     0   :  { %vm82_vm0 = vcmask 654336   ;;  %vm144_vm1 = vcmask 261120   ;;  %s318_s1 = inlined_call_operand.vmem [shape: f32[128,80], index: 1, kind: input, shape index: {}]   ;;  %s319_s3 = inlined_call_operand.vmem [shape: f32[80,80], index: 3, kind: input, shape index: {}]   ;;  %s320_s2 = inlined_call_operand.vmem [shape: f32[1,80], index: 2, kind: input, shape index: {}]   ;;  %s321_s0 = inlined_call_operand.vmem [shape: f32[8,128], index: 0, kind: input, shape index: {}]   ;;  %s322_s4 = inlined_call_operand.vmem [shape: f32[1,80], index: 4, kind: input, shape index: {}]   ;;  %s323_s5 = inlined_call_operand.vmem [shape: f32[80,32], index: 5, kind: input, shape index: {}]   ;;  %s324_s6 = inlined_call_operand.vmem [shape: f32[1,32], index: 6, kind: input, shape index: {}]   ;;  %s325_s7 = inlined_call_operand.vmem [shape: f32[8,32], index: 7, kind: output, shape index: {}]  }
   0x1   :  { %v42_v0 = vld [vmem:[%s318_s1 + $0x78] sm:$0xff]  ;;  %v41_v1 = vld [vmem:[%s318_s1 + $0x70] sm:$0xff]  ;;  %v40_v2 = vld [vmem:[%s318_s1 + $0x68] sm:$0xff] }
   0x2   :  { %47 = vmatpush.msra.mxu0 %v42_v0  ;;  %v39_v3 = vld [vmem:[%s318_s1 + $0x60] sm:$0xff]  ;;  %v77_v4 = vld [vmem:[%s319_s3 + $0x48] sm:$0xff]  ;;  %v38_v5 = vld [vmem:[%s318_s1 + $0x58] sm:$0xff] }
   0x3   :  { %92 = vmatpush.msra.mxu1 %v77_v4  ;;  %v76_v6 = vld [vmem:[%s319_s3 + $0x40] sm:$0xff]  ;;  %v75_v7 = vld [vmem:[%s319_s3 + $0x38] sm:$0xff]  ;;  %v37_v8 = vld [vmem:[%s318_s1 + $0x50] sm:$0xff] }
   0x4   :  { %48 = vmatpush.msra.mxu0 %v41_v1  ;;  %v74_v9 = vld [vmem:[%s319_s3 + $0x30] sm:$0xff]  ;;  %v36_v10 = vld [vmem:[%s318_s1 + $0x48] sm:$0xff]  ;;  %v35_v12 = vld [vmem:[%s318_s1 + $0x40] sm:$0xff] }
   0x5   :  { %93 = vmatpush.msra.mxu1 %v76_v6  ;;  %v73_v11 = vld [vmem:[%s319_s3 + $0x28] sm:$0xff]  ;;  %v72_v13 = vld [vmem:[%s319_s3 + $0x20] sm:$0xff]  ;;  %v34_v14 = vld [vmem:[%s318_s1 + $0x38] sm:$0xff] }
   0x6   :  { %49 = vmatpush.msra.mxu0 %v40_v2  ;;  %v71_v15 = vld [vmem:[%s319_s3 + $0x18] sm:$0xff]  ;;  %v33_v16 = vld [vmem:[%s318_s1 + $0x30] sm:$0xff]  ;;  %v32_v17 = vld [vmem:[%s318_s1 + $0x28] sm:$0xff] }
   0x7   :  { %94 = vmatpush.msra.mxu1 %v75_v7  ;;  %v31_v18 = vld [vmem:[%s318_s1 + $0x20] sm:$0xff]  ;;  %v30_v19 = vld [vmem:[%s318_s1 + $0x18] sm:$0xff]  ;;  %v29_v20 = vld [vmem:[%s318_s1 + $0x10] sm:$0xff] }
   0x8   :  { %50 = vmatpush.msra.mxu0 %v39_v3  ;;  %v28_v21 = vld [vmem:[%s318_s1 + $0x8] sm:$0xff]  ;;  %v27_v22 = vld [vmem:[%s318_s1] sm:$0xff]  ;;  %v70_v24 = vld [vmem:[%s319_s3 + $0x10] sm:$0xff] }
   0x9   :  { %95 = vmatpush.msra.mxu1 %v74_v9  ;;  %v26_v23 = vld [vmem:[%s321_s0] sm:$0xff]  ;;  %v69_v25 = vld [vmem:[%s319_s3 + $0x8] sm:$0xff]  ;;  %v114_v29 = vld [vmem:[%s323_s5 + $0x38] sm:$0xff] }
   0xa   :  { %51 = vmatpush.msra.mxu0 %v38_v5  ;;  %v68_v26 = vld [vmem:[%s319_s3] sm:$0xff]  ;;  %v116_v27 = vld [vmem:[%s323_s5 + $0x48] sm:$0xff]  ;;  %v113_v30 = vld [vmem:[%s323_s5 + $0x30] sm:$0xff] }
   0xb   :  { %96 = vmatpush.msra.mxu1 %v73_v11  ;;  %v115_v28 = vld [vmem:[%s323_s5 + $0x40] sm:$0xff]  ;;  %130 = vmatpush.msra.mxu2 %v116_v27  ;;  %v112_v31 = vld [vmem:[%s323_s5 + $0x28] sm:$0xff]  ;;  %v110_v33 = vld [vmem:[%s323_s5 + $0x18] sm:$0xff] }
   0xc   :  { %52 = vmatpush.msra.mxu0 %v37_v8  ;;  %v111_v32 = vld [vmem:[%s323_s5 + $0x20] sm:$0xff]  ;;  %v109_v38 = vld [vmem:[%s323_s5 + $0x10] sm:$0xff]  ;;  %v108_v39 = vld [vmem:[%s323_s5 + $0x8] sm:$0xff] }
   0xd   :  { %97 = vmatpush.msra.mxu1 %v72_v13  ;;  %131 = vmatpush.msra.mxu2 %v115_v28  ;;  %v152_v34 = vld [vmem:[%s320_s2] ss:$0 sm:$0xff] }
   0xe   :  { %53 = vmatpush.msra.mxu0 %v36_v10  ;;  %v107_v40 = vld [vmem:[%s323_s5] sm:$0xff] }
   0xf   :  { %98 = vmatpush.msra.mxu1 %v71_v15  ;;  %132 = vmatpush.msra.mxu2 %v114_v29  ;;  %v153_v41 = vld [vmem:[%s322_s4] ss:$0 sm:$0xff] }
  0x10   :  { %54 = vmatpush.msra.mxu0 %v35_v12  ;;  %v154_v45 = vld [vmem:[%s324_s6] ss:$0 sm:$0xff] }
  0x11   :  { %99 = vmatpush.msra.mxu1 %v70_v24  ;;  %133 = vmatpush.msra.mxu2 %v113_v30 }
  0x12   :  { %55 = vmatpush.msra.mxu0 %v34_v14 }
  0x13   :  { %100 = vmatpush.msra.mxu1 %v69_v25  ;;  %134 = vmatpush.msra.mxu2 %v112_v31 }
  0x14   :  { %56 = vmatpush.msra.mxu0 %v33_v16 }
  0x15   :  { %101 = vmatpush.msra.mxu1 %v68_v26  ;;  %135 = vmatpush.msra.mxu2 %v111_v32 }
  0x16   :  { %57 = vmatpush.msra.mxu0 %v32_v17 }
  0x17   :  { %136 = vmatpush.msra.mxu2 %v110_v33 }
  0x18   :  { %58 = vmatpush.msra.mxu0 %v31_v18 }
  0x19   :  { %137 = vmatpush.msra.mxu2 %v109_v38 }
  0x1a   :  { %59 = vmatpush.msra.mxu0 %v30_v19 }
  0x1b   :  { %138 = vmatpush.msra.mxu2 %v108_v39 }
  0x1c   :  { %60 = vmatpush.msra.mxu0 %v29_v20 }
  0x1d   :  { %139 = vmatpush.msra.mxu2 %v107_v40 }
  0x1e   :  { %61 = vmatpush.msra.mxu0 %v28_v21 }
  0x20   :  { %62 = vmatpush.msra.mxu0 %v27_v22 }
  0x21   :  { %63 = vmatmul.f32.vlgmr.msra.gmra.mxu0 %v26_v23 }
  0x9e   :  { %v64_v35 = vpop.f32.mrf.mxu0 }
  0x9f   :  { %v65_v36 = vadd.f32 %v152_v34, %v64_v35 }
  0xa1   :  { %v67_v37 = vmax.f32 %v65_v36, 0.0 }
  0xa3   :  { %150 = vmatmul.msk.f32.vlgmr.msra.gmra.mxu1 %vm82_vm0, %v67_v37 }
 0x120   :  { %v103_v42 = vpop.f32.mrf.mxu1 }
 0x121   :  { %v104_v43 = vadd.f32 %v153_v41, %v103_v42 }
 0x123   :  { %v106_v44 = vmax.f32 %v104_v43, 0.0 }
 0x125   :  { %151 = vmatmul.msk.f32.vlgmr.msra.gmra.mxu2 %vm82_vm0, %v106_v44 }
 0x1a8   :  { %v141_v46 = vpop.f32.mrf.mxu2 }
 0x1a9   :  { %v142_v47 = vadd.f32 %v154_v45, %v141_v46 }
 0x1ab   :  { %145 = vst.msk [vmem:[%s325_s7] sm:$0xff] %vm144_vm1, %v142_v47 }

</bundles_post_ra>
